<compile_context>
chip_gen: v6e
topology: v6e:2x2x1
jax: 0.10.0
libtpu: 0.0.40
codegen_flags: <defaults>
</compile_context>

<pallas_src>
import math

import jax
import jax.numpy as jnp
from jax import lax
from jax.experimental import pallas as pl
from jax.experimental.pallas import tpu as pltpu

_NEG = -1e30  # large finite negative: padded columns contribute exp() == 0
              # without any inf - inf -> NaN hazard.


def make_ntxent_kernel(M, bs, tm, n_col_tiles, temperature, factor):
    """M = 2*bs rows; row tiles of tm rows; n_col_tiles queue column tiles."""
    inv_temp = 1.0 / float(temperature)

    def kernel(rep_ref, q_ref, bias_ref, out_ref, reps_sc, m_sc, l_sc, tgt_sc):
        i = pl.program_id(0)                    # row tile       ("parallel")
        j = pl.program_id(1)                    # queue col tile ("arbitrary")
        row0 = pl.multiple_of(i * tm, tm)

        @pl.when(j == 0)
        def _init():
            # Fold 1/temperature into the (tm, D) LHS once -> no O(M*N) rescale.
            rows = rep_ref[pl.ds(row0, tm), :].astype(jnp.float32) * inv_temp
            rows = rows.astype(jnp.bfloat16)
            reps_sc[...] = rows

            # First M columns of sim ("rep block"): the diagonal mask and the
            # positive-pair target logits live only in this (tm, M) corner,
            # and its column bias is 0 (order[0] == 0).
            sim_rr = lax.dot_general(
                rows, rep_ref[...],
                dimension_numbers=(((1,), (1,)), ((), ())),
                preferred_element_type=jnp.float32)              # (tm, M)
            r = lax.broadcasted_iota(jnp.int32, (tm, M), 0) + row0
            c = lax.broadcasted_iota(jnp.int32, (tm, M), 1)
            sim_rr = jnp.where(r == c, _NEG, sim_rr)             # fill_diagonal_(-inf)
            # label[r] = (r + bs) % M  (never on the diagonal for bs >= 1)
            tcol = jnp.where(r + bs >= M, r + bs - M, r + bs)
            tgt_sc[...] = jnp.sum(jnp.where(c == tcol, sim_rr, 0.0),
                                  axis=1, keepdims=True)
            m0 = jnp.max(sim_rr, axis=1, keepdims=True)
            m_sc[...] = m0
            l_sc[...] = jnp.sum(jnp.exp(sim_rr - m0), axis=1, keepdims=True)

        # Stream one (tn, D) queue tile: online logsumexp update.
        s = lax.dot_general(
            reps_sc[...], q_ref[...],
            dimension_numbers=(((1,), (1,)), ((), ())),
            preferred_element_type=jnp.float32)                  # (tm, tn)
        s = s + bias_ref[...]     # per-column order*ln_alpha/T; padding -> -1e30
        m_prev = m_sc[...]
        m_new = jnp.maximum(m_prev, jnp.max(s, axis=1, keepdims=True))
        corr = jnp.exp(m_prev - m_new)
        l_sc[...] = corr * l_sc[...] + jnp.sum(jnp.exp(s - m_new),
                                               axis=1, keepdims=True)
        m_sc[...] = m_new

        @pl.when(j == n_col_tiles - 1)
        def _finish():
            lse = jnp.log(l_sc[...]) + m_sc[...]                 # (tm, 1)
            out_ref[...] = factor * lse - tgt_sc[...]            # per-row loss term

    return kernel


def ntxent_queue_loss(zis, zjs, queue, *, temperature, ln_alpha,
                      factor=1.0, world_size=1.0, tm=None, tn=512):
    bs, dim = zis.shape
    K = queue.shape[0]
    M = 2 * bs
    assert K > 0 and K % M == 0, "queue length must be a multiple of 2*bs"

    # bf16 operands (f32 MXU accumulation): halves queue-side HBM traffic.
    # TODO(synk): in production keep the queue stored in bf16 so this cast is free.
    rep = jnp.concatenate([zis, zjs], axis=0).astype(jnp.bfloat16)      # (M, D)
    q = queue.astype(jnp.bfloat16)                                      # (K, D)

    # Row tiling (lets v7x's two TensorCores split the row axis).
    if tm is None:
        tm = M if M <= 256 else 256
    tm = min(tm, M)
    assert M % tm == 0 and tm % 8 == 0
    n_row_tiles = M // tm

    # Column tiling over the queue: lane-aligned tiles, ragged tail padded with
    # zero rows + -1e30 bias so padded columns contribute exactly 0 to the lse.
    assert tn % 128 == 0
    n_col_tiles = pl.cdiv(K, tn)
    K_pad = n_col_tiles * tn
    if K_pad != K:
        # NOTE: this pad copies the queue once; size K as a multiple of tn to avoid it.
        q = jnp.concatenate([q, jnp.zeros((K_pad - K, dim), jnp.bfloat16)], axis=0)

    inv_temp = 1.0 / float(temperature)
    # TODO(synk): TensorQueue.get_order is not provided; assume it returns the
    # per-chunk "age" 1..K//(2*bs) of each enqueued rep-chunk (most recent = 1).
    col = jnp.arange(K_pad)
    group = (col // M).astype(jnp.float32)
    bias = jnp.where(col < K, (group + 1.0) * (float(ln_alpha) * inv_temp), _NEG)
    bias = bias.reshape(1, K_pad).astype(jnp.float32)

    kernel = make_ntxent_kernel(M, bs, tm, n_col_tiles, temperature, factor)

    cost = pl.CostEstimate(
        flops=2 * M * (M + K_pad) * dim,
        transcendentals=M * (M + K_pad),
        bytes_accessed=2 * (M * dim + n_row_tiles * K_pad * dim) + 4 * (K_pad + M))

    per_row = pl.pallas_call(
        kernel,
        out_shape=jax.ShapeDtypeStruct((M, 1), jnp.float32),
        grid_spec=pltpu.PrefetchScalarGridSpec(
            num_scalar_prefetch=0,
            grid=(n_row_tiles, n_col_tiles),
            in_specs=[
                pl.BlockSpec((M, dim), lambda i, j: (0, 0)),    # rep (VMEM-resident)
                pl.BlockSpec((tn, dim), lambda i, j: (j, 0)),   # streamed queue tile
                pl.BlockSpec((1, tn), lambda i, j: (0, j)),     # column bias tile
            ],
            out_specs=pl.BlockSpec((tm, 1), lambda i, j: (i, 0)),
            scratch_shapes=[
                pltpu.VMEM((tm, dim), jnp.bfloat16),            # rep rows * 1/T
                pltpu.VMEM((tm, 1), jnp.float32),               # running max
                pltpu.VMEM((tm, 1), jnp.float32),               # running sum
                pltpu.VMEM((tm, 1), jnp.float32),               # target logits
            ]),
        compiler_params=pltpu.CompilerParams(
            dimension_semantics=("parallel", "arbitrary"),
            vmem_limit_bytes=32 * 1024 * 1024),
        cost_estimate=cost,
    )(rep, q, bias)

    # per_row[i] = factor * lse_i - sim[i, label_i]; mean over the true M rows.
    return jnp.sum(per_row) * (world_size / M)


def _reference_loss(zis, zjs, queue, *, temperature, ln_alpha, factor, world_size):
    """Pure-JAX f32 reference mirroring the PyTorch forward op order."""
    bs, _ = zis.shape
    M = 2 * bs
    K = queue.shape[0]
    n_groups = K // M
    rep = jnp.concatenate([zis, zjs], axis=0)
    rep_queue = jnp.concatenate([rep, queue], axis=0)
    sim = rep @ rep_queue.T
    order = jnp.concatenate(
        [jnp.zeros((1,)), jnp.arange(1, n_groups + 1, dtype=jnp.float32)]) * ln_alpha
    sim = sim + jnp.repeat(order, M)[None, :]
    sim = sim / temperature
    sim = jnp.where(jnp.eye(M, M + K, dtype=bool), -jnp.inf, sim)
    label = jnp.concatenate([jnp.arange(bs, 2 * bs), jnp.arange(bs)])
    lse = jax.scipy.special.logsumexp(sim, axis=1)
    tgt = sim[jnp.arange(M), label]
    ce = jnp.mean(lse - tgt)
    loss = ce - (1.0 - factor) * jnp.mean(lse)
    return loss * world_size


if __name__ == "__main__":
    key = jax.random.PRNGKey(0)
    bs, dim = 16, 128
    K = 480   # 15 queue chunks of size 2*bs; NOT a multiple of the 128-wide
              # column tile, so the padded-tail path is exercised.
    k1, k2, k3 = jax.random.split(key, 3)
    zis = jax.random.normal(k1, (bs, dim), jnp.float32)
    zjs = jax.random.normal(k2, (bs, dim), jnp.float32)
    queue = jax.random.normal(k3, (K, dim), jnp.float32)
    # Contrastive embeddings are L2-normalized upstream of this loss.
    zis = zis / jnp.linalg.norm(zis, axis=1, keepdims=True)
    zjs = zjs / jnp.linalg.norm(zjs, axis=1, keepdims=True)
    queue = queue / jnp.linalg.norm(queue, axis=1, keepdims=True)

    temperature = 0.07
    alpha = 0.5                    # alpha_policy=None -> ln_alpha = log(alpha)
    denominator_ce_factor = 0.9    # criterion_type='DeCE'
    world_size = 1.0
    ln_alpha = math.log(alpha)

    loss = ntxent_queue_loss(
        zis, zjs, queue,
        temperature=temperature, ln_alpha=ln_alpha,
        factor=denominator_ce_factor, world_size=world_size,
        tm=16, tn=128)
    loss = jax.block_until_ready(loss)

    # Reference on the same bf16-rounded operands (f32 math, PyTorch op order),
    # so the check isolates kernel correctness from input quantization.
    to32 = lambda x: x.astype(jnp.bfloat16).astype(jnp.float32)
    ref = _reference_loss(
        to32(zis), to32(zjs), to32(queue),
        temperature=temperature, ln_alpha=ln_alpha,
        factor=denominator_ce_factor, world_size=world_size)

    assert jnp.isfinite(loss), "loss is not finite"
    assert jnp.allclose(loss, ref, rtol=2e-2, atol=2e-2), (loss, ref)
    print("KERNEL_OK")
</pallas_src>

<mosaic_0001>
module attributes {stable_mosaic.version = 11 : i64} {
  func.func @kernel(%arg0: i32, %arg1: i32, %arg2: memref<32x128xbf16, #tpu.memory_space<vmem>>, %arg3: memref<128x128xbf16, #tpu.memory_space<vmem>>, %arg4: memref<1x128xf32, #tpu.memory_space<vmem>>, %arg5: memref<16x1xf32, #tpu.memory_space<vmem>>, %arg6: memref<16x128xbf16, #tpu.memory_space<vmem>>, %arg7: memref<16x1xf32, #tpu.memory_space<vmem>>, %arg8: memref<16x1xf32, #tpu.memory_space<vmem>>, %arg9: memref<16x1xf32, #tpu.memory_space<vmem>>) attributes {dimension_semantics = [#tpu.dimension_semantics<parallel>, #tpu.dimension_semantics<arbitrary>], iteration_bounds = array<i64: 2, 4>, scalar_prefetch = 0 : i64, scratch_operands = 4 : i64, tpu.core_type = #tpu.core_type<tc>, window_params = [{pipeline_mode = #tpu.pipeline_mode<synchronous>, transform_indices = @transform_0, window_bounds = array<i64: 32, 128>}, {transform_indices = @transform_1, window_bounds = array<i64: 128, 128>}, {transform_indices = @transform_2, window_bounds = array<i64: 1, 128>}, {transform_indices = @transform_3, window_bounds = array<i64: 16, 1>}]} {
    %c16_i32 = arith.constant 16 : i32
    %0 = arith.muli %arg0, %c16_i32 : i32
    %1 = tpu.assume_multiple %0, 16 : i32
    %c0_i32 = arith.constant 0 : i32
    %2 = arith.cmpi eq, %arg1, %c0_i32 : i32
    %3 = arith.extui %2 : i1 to i32
    %c0_i32_0 = arith.constant 0 : i32
    %4 = arith.cmpi ne, %3, %c0_i32_0 : i32
    scf.if %4 {
      %30 = arith.index_cast %1 : i32 to index
      %c0_17 = arith.constant 0 : index
      %31 = vector.load %arg2[%30, %c0_17] : memref<32x128xbf16, #tpu.memory_space<vmem>>, vector<16x128xbf16>
      %32 = arith.extf %31 : vector<16x128xbf16> to vector<16x128xf32>
      %cst_18 = arith.constant 14.2857141 : f32
      %33 = vector.broadcast %cst_18 : f32 to vector<16x128xf32>
      %34 = arith.mulf %32, %33 : vector<16x128xf32>
      %35 = arith.truncf %34 : vector<16x128xf32> to vector<16x128xbf16>
      %c0_19 = arith.constant 0 : index
      %c0_20 = arith.constant 0 : index
      %36 = vector.load %arg6[%c0_19, %c0_20] : memref<16x128xbf16, #tpu.memory_space<vmem>>, vector<16x128xbf16>
      tpu.vector_store %arg6[%c0_19, %c0_20], %35 {strides = array<i32>} : memref<16x128xbf16, #tpu.memory_space<vmem>>, vector<16x128xbf16>,
      %c0_21 = arith.constant 0 : index
      %c0_22 = arith.constant 0 : index
      %37 = vector.load %arg2[%c0_21, %c0_22] : memref<32x128xbf16, #tpu.memory_space<vmem>>, vector<32x128xbf16>
      %cst_23 = arith.constant dense<0.000000e+00> : vector<16x32xf32>
      %38 = tpu.matmul %35, %37, %cst_23 {dimension_numbers = #tpu.dot_dimension_numbers<[1], [1], [0], [0], [0, 0, 1, 0], [], []>} : vector<16x128xbf16>, vector<32x128xbf16>, vector<16x32xf32> -> vector<16x32xf32>
      %39 = tpu.iota {dimensions = array<i32: 0>} : vector<16x32xi32>
      %40 = vector.broadcast %1 : i32 to vector<16x32xi32>
      %41 = arith.addi %39, %40 : vector<16x32xi32>
      %42 = tpu.iota {dimensions = array<i32: 1>} : vector<16x32xi32>
      %43 = arith.cmpi eq, %41, %42 : vector<16x32xi32>
      %cst_24 = arith.constant -1.000000e+30 : f32
      %44 = vector.broadcast %cst_24 : f32 to vector<16x32xf32>
      %45 = arith.select %43, %44, %38 : vector<16x32xi1>, vector<16x32xf32>
      %c16_i32_25 = arith.constant 16 : i32
      %46 = vector.broadcast %c16_i32_25 : i32 to vector<16x32xi32>
      %47 = arith.addi %41, %46 : vector<16x32xi32>
      %c32_i32 = arith.constant 32 : i32
      %48 = vector.broadcast %c32_i32 : i32 to vector<16x32xi32>
      %49 = arith.cmpi sge, %47, %48 : vector<16x32xi32>
      %c16_i32_26 = arith.constant 16 : i32
      %50 = vector.broadcast %c16_i32_26 : i32 to vector<16x32xi32>
      %51 = arith.addi %41, %50 : vector<16x32xi32>
      %c32_i32_27 = arith.constant 32 : i32
      %52 = vector.broadcast %c32_i32_27 : i32 to vector<16x32xi32>
      %53 = arith.subi %51, %52 : vector<16x32xi32>
      %c16_i32_28 = arith.constant 16 : i32
      %54 = vector.broadcast %c16_i32_28 : i32 to vector<16x32xi32>
      %55 = arith.addi %41, %54 : vector<16x32xi32>
      %56 = arith.select %49, %53, %55 : vector<16x32xi1>, vector<16x32xi32>
      %57 = arith.cmpi eq, %42, %56 : vector<16x32xi32>
      %cst_29 = arith.constant 0.000000e+00 : f32
      %58 = vector.broadcast %cst_29 : f32 to vector<16x32xf32>
      %59 = arith.select %57, %45, %58 : vector<16x32xi1>, vector<16x32xf32>
      %cst_30 = arith.constant dense<0.000000e+00> : vector<16xf32>
      %60 = vector.multi_reduction <add>, %59, %cst_30 [1] : vector<16x32xf32> to vector<16xf32>
      %61 = vector.shape_cast %60 : vector<16xf32> to vector<16x1xf32>
      %c0_31 = arith.constant 0 : index
      %c0_32 = arith.constant 0 : index
      %62 = vector.load %arg9[%c0_31, %c0_32] : memref<16x1xf32, #tpu.memory_space<vmem>>, vector<16x1xf32>
      tpu.vector_store %arg9[%c0_31, %c0_32], %61 {strides = array<i32>} : memref<16x1xf32, #tpu.memory_space<vmem>>, vector<16x1xf32>,
      %cst_33 = arith.constant dense<0xFF800000> : vector<16xf32>
      %63 = vector.multi_reduction <maximumf>, %45, %cst_33 [1] : vector<16x32xf32> to vector<16xf32>
      %64 = vector.shape_cast %63 : vector<16xf32> to vector<16x1xf32>
      %c0_34 = arith.constant 0 : index
      %c0_35 = arith.constant 0 : index
      %65 = vector.load %arg7[%c0_34, %c0_35] : memref<16x1xf32, #tpu.memory_space<vmem>>, vector<16x1xf32>
      tpu.vector_store %arg7[%c0_34, %c0_35], %64 {strides = array<i32>} : memref<16x1xf32, #tpu.memory_space<vmem>>, vector<16x1xf32>,
      %66 = vector.broadcast %64 : vector<16x1xf32> to vector<16x32xf32>
      %67 = arith.subf %45, %66 : vector<16x32xf32>
      %68 = math.exp %67 : vector<16x32xf32>
      %cst_36 = arith.constant dense<0.000000e+00> : vector<16xf32>
      %69 = vector.multi_reduction <add>, %68, %cst_36 [1] : vector<16x32xf32> to vector<16xf32>
      %70 = vector.shape_cast %69 : vector<16xf32> to vector<16x1xf32>
      %c0_37 = arith.constant 0 : index
      %c0_38 = arith.constant 0 : index
      %71 = vector.load %arg8[%c0_37, %c0_38] : memref<16x1xf32, #tpu.memory_space<vmem>>, vector<16x1xf32>
      tpu.vector_store %arg8[%c0_37, %c0_38], %70 {strides = array<i32>} : memref<16x1xf32, #tpu.memory_space<vmem>>, vector<16x1xf32>,
    } else {
    }
    %c0 = arith.constant 0 : index
    %c0_1 = arith.constant 0 : index
    %5 = vector.load %arg6[%c0, %c0_1] : memref<16x128xbf16, #tpu.memory_space<vmem>>, vector<16x128xbf16>
    %c0_2 = arith.constant 0 : index
    %c0_3 = arith.constant 0 : index
    %6 = vector.load %arg3[%c0_2, %c0_3] : memref<128x128xbf16, #tpu.memory_space<vmem>>, vector<128x128xbf16>
    %cst = arith.constant dense<0.000000e+00> : vector<16x128xf32>
    %7 = tpu.matmul %5, %6, %cst {dimension_numbers = #tpu.dot_dimension_numbers<[1], [1], [0], [0], [0, 0, 1, 0], [], []>} : vector<16x128xbf16>, vector<128x128xbf16>, vector<16x128xf32> -> vector<16x128xf32>
    %c0_4 = arith.constant 0 : index
    %c0_5 = arith.constant 0 : index
    %8 = vector.load %arg4[%c0_4, %c0_5] : memref<1x128xf32, #tpu.memory_space<vmem>>, vector<1x128xf32>
    %9 = vector.broadcast %8 : vector<1x128xf32> to vector<16x128xf32>
    %10 = arith.addf %7, %9 : vector<16x128xf32>
    %c0_6 = arith.constant 0 : index
    %c0_7 = arith.constant 0 : index
    %11 = vector.load %arg7[%c0_6, %c0_7] : memref<16x1xf32, #tpu.memory_space<vmem>>, vector<16x1xf32>
    %cst_8 = arith.constant dense<0xFF800000> : vector<16xf32>
    %12 = vector.multi_reduction <maximumf>, %10, %cst_8 [1] : vector<16x128xf32> to vector<16xf32>
    %13 = vector.shape_cast %12 : vector<16xf32> to vector<16x1xf32>
    %14 = arith.maximumf %11, %13 : vector<16x1xf32>
    %15 = arith.subf %11, %14 : vector<16x1xf32>
    %16 = math.exp %15 : vector<16x1xf32>
    %c0_9 = arith.constant 0 : index
    %c0_10 = arith.constant 0 : index
    %17 = vector.load %arg8[%c0_9, %c0_10] : memref<16x1xf32, #tpu.memory_space<vmem>>, vector<16x1xf32>
    %18 = arith.mulf %16, %17 : vector<16x1xf32>
    %19 = vector.broadcast %14 : vector<16x1xf32> to vector<16x128xf32>
    %20 = arith.subf %10, %19 : vector<16x128xf32>
    %21 = math.exp %20 : vector<16x128xf32>
    %cst_11 = arith.constant dense<0.000000e+00> : vector<16xf32>
    %22 = vector.multi_reduction <add>, %21, %cst_11 [1] : vector<16x128xf32> to vector<16xf32>
    %23 = vector.shape_cast %22 : vector<16xf32> to vector<16x1xf32>
    %24 = arith.addf %18, %23 : vector<16x1xf32>
    %c0_12 = arith.constant 0 : index
    %c0_13 = arith.constant 0 : index
    %25 = vector.load %arg8[%c0_12, %c0_13] : memref<16x1xf32, #tpu.memory_space<vmem>>, vector<16x1xf32>
    tpu.vector_store %arg8[%c0_12, %c0_13], %24 {strides = array<i32>} : memref<16x1xf32, #tpu.memory_space<vmem>>, vector<16x1xf32>,
    %c0_14 = arith.constant 0 : index
    %c0_15 = arith.constant 0 : index
    %26 = vector.load %arg7[%c0_14, %c0_15] : memref<16x1xf32, #tpu.memory_space<vmem>>, vector<16x1xf32>
    tpu.vector_store %arg7[%c0_14, %c0_15], %14 {strides = array<i32>} : memref<16x1xf32, #tpu.memory_space<vmem>>, vector<16x1xf32>,
    %c3_i32 = arith.constant 3 : i32
    %27 = arith.cmpi eq, %arg1, %c3_i32 : i32
    %28 = arith.extui %27 : i1 to i32
    %c0_i32_16 = arith.constant 0 : i32
    %29 = arith.cmpi ne, %28, %c0_i32_16 : i32
    scf.if %29 {
      %c0_17 = arith.constant 0 : index
      %c0_18 = arith.constant 0 : index
      %30 = vector.load %arg8[%c0_17, %c0_18] : memref<16x1xf32, #tpu.memory_space<vmem>>, vector<16x1xf32>
      %31 = math.log %30 : vector<16x1xf32>
      %c0_19 = arith.constant 0 : index
      %c0_20 = arith.constant 0 : index
      %32 = vector.load %arg7[%c0_19, %c0_20] : memref<16x1xf32, #tpu.memory_space<vmem>>, vector<16x1xf32>
      %33 = arith.addf %31, %32 : vector<16x1xf32>
      %cst_21 = arith.constant 0.899999976 : f32
      %34 = vector.broadcast %cst_21 : f32 to vector<16x1xf32>
      %35 = arith.mulf %34, %33 : vector<16x1xf32>
      %c0_22 = arith.constant 0 : index
      %c0_23 = arith.constant 0 : index
      %36 = vector.load %arg9[%c0_22, %c0_23] : memref<16x1xf32, #tpu.memory_space<vmem>>, vector<16x1xf32>
      %37 = arith.subf %35, %36 : vector<16x1xf32>
      %c0_24 = arith.constant 0 : index
      %c0_25 = arith.constant 0 : index
      %38 = vector.load %arg5[%c0_24, %c0_25] : memref<16x1xf32, #tpu.memory_space<vmem>>, vector<16x1xf32>
      tpu.vector_store %arg5[%c0_24, %c0_25], %37 {strides = array<i32>} : memref<16x1xf32, #tpu.memory_space<vmem>>, vector<16x1xf32>,
    } else {
    }
    return
  }
  func.func @transform_0(%arg0: i32, %arg1: i32) -> (i32, i32) {
    %c0_i32 = arith.constant 0 : i32
    %c0_i32_0 = arith.constant 0 : i32
    %c0_i32_1 = arith.constant 0 : i32
    return %c0_i32, %c0_i32_0 : i32, i32
  }
  func.func @transform_1(%arg0: i32, %arg1: i32) -> (i32, i32) {
    %c0_i32 = arith.constant 0 : i32
    %c0_i32_0 = arith.constant 0 : i32
    return %arg1, %c0_i32 : i32, i32
  }
  func.func @transform_2(%arg0: i32, %arg1: i32) -> (i32, i32) {
    %c0_i32 = arith.constant 0 : i32
    %c0_i32_0 = arith.constant 0 : i32
    return %c0_i32, %arg1 : i32, i32
  }
  func.func @transform_3(%arg0: i32, %arg1: i32) -> (i32, i32) {
    %c0_i32 = arith.constant 0 : i32
    %c0_i32_0 = arith.constant 0 : i32
    return %arg0, %c0_i32 : i32, i32
  }
}

</mosaic_0001>

<bundles_post_ra>
// kernel: tpu_custom_call.1
= control target key start
LH: loop header
LB: loop body
LE: loop exit
PB: predicated region body
PF: predicated region fallthrough
CT: control target
= control target key end

     0   :  { %8 = vsyncpa [#allocation7], 0  ;;  %s1292_s0 = inlined_call_operand.hbm [shape: bf16[32,128], index: 0, kind: input, shape index: {}]   ;;  %s1293_s1 = inlined_call_operand.hbm [shape: bf16[512,128], index: 1, kind: input, shape index: {}]   ;;  %s1294_s2 = inlined_call_operand.hbm [shape: f32[1,512], index: 2, kind: input, shape index: {}]   ;;  %s1295_s3 = inlined_call_operand.vmem [shape: f32[32,1], index: 3, kind: output, shape index: {}]  }
   0x1   :  { %9 = vsyncpa [#allocation9], 0 }
   0x2   :  { %11 = vsyncpa [#allocation9 + $0x1], 0  ;;  %s1082_s12 = smov 0   ;;  %s1084_s13 = smov 0  }
   0x3   :  { %s1086_s14 = smov 0   ;;  %s1088_s15 = smov 0  }
   0x4   :  { %s1090_s16 = smov 0   ;;  %s1092_s17 = smov 0  }
   0x5   :  { %s1094_s18 = smov 0   ;;  %s1096_s19 = smov 0  }
   0x6 LB: > { %s26_s20 = sadd.s32 1, %s1042_s17  ;;  %s29_s21 = sadd.s32 1, %s1046_s18  ;;  %s1050_s19 = sphi %s1096_s19, %s17_s19   ;;  %s1046_s18 = sphi %s1094_s18, %s1316_s18   ;;  %s1042_s17 = sphi %s1092_s17, %s1315_s17   ;;  %s1038_s16 = sphi %s1090_s16, %s1314_s16   ;;  %s1034_s15 = sphi %s1088_s15, %s1313_s15   ;;  %s1030_s14 = sphi %s1086_s14, %s1312_s14   ;;  %s1026_s13 = sphi %s1084_s13, %s1311_s13   ;;  %s1022_s12 = sphi %s1082_s12, %s1310_s12  }
   0x7   : > { %p27_p0 = scmp.ge.s32.totalorder %s26_s20, 4  ;;  %s57_s22 = sadd.s32 1, %s1030_s14 }
   0x8   : > { %p64_p1 = scmp.ne.s32.totalorder %s1030_s14, %s1026_s13  ;;  %p65_p2 = scmp.eq.s32.totalorder %s1050_s19, 0 }
   0x9   : > { %s1318_s20 = smov (%p27_p0, %s26_s20), 0  ;;  %s1320_s21 = smov (!%p27_p0, %s29_s21), %s1046_s18 }
   0xa   : > { %s54_s23 = ssub.s32 %s1042_s17, %s1318_s20  ;;  %p1133_p3 = por %p65_p2, %p64_p1 }
   0xb   : > { %p31_p4 = scmp.ge.s32.totalorder %s1320_s21, 2  ;;  %p55_p5 = scmp.eq.s32.totalorder %s54_s23, 0 }
   0xc   : > { %p795_p6 = scmp.lt.s32.totalorder %s1050_s19, 8  ;;  %s159_s26 = sand.u32 1, %s1050_s19  }
   0xd   : > { %s1322_s21 = smov (%p31_p4, %s1320_s21), 0  ;;  %s161_s27 = sand.u32 1, %s1030_s14  }
   0xe   : > { %s1140_s25 = scalar_select %p55_p5, %s1030_s14, %s57_s22  }
   0xf   : > { %s692_s28 = sshll.u32 %s161_s27, 6  ;;  %s723_s29 = sshll.u32 %s1042_s17, 10 }
  0x10   : > { %s169_s5 = scalar_lea.hbm %s1293_s1, %s723_s29  ;;  %s163_s6 = scalar_lea.vmem [#allocation8], %s692_s28 }
  0x11   : > { %s170_s7 = sshll.u32 %s163_s6, 4  ;;  %p1153_p7 = pnand %p795_p6, %p1133_p3  ;;  %s171_s7 = int_to_ptr.vmem [resolvable:$true] %s170_s7 }
  0x12   : > { %s1157_s9 = scalar_lea.sflag [#allocation9], %s159_s26  ;;  %s911_s10 = scalar_lea.vmem %s171_s7, 1024 }
  0x13   : > { %p1297_p8 = pneg %p1153_p7  ;;  %p912_p9 = scmp.ne.s32.totalorder %s171_s7, %s911_s10 }
  0x14   : > { %s1052_s11 = smov [#allocation8]  }
  0x15   : > { %p914_p10 = pnand %p912_p9, %p1297_p8  ;;  %s916_s22 = sshll.u32 %s1052_s11, 4  ;;  %s917_s22 = int_to_ptr.vmem [resolvable:$false] %s916_s22 }
  0x16   : > { %s918_s23 = scalar_lea.vmem %s917_s22, 2048  ;;  %p919_p12 = scmp.lt.s32.totalorder %s171_s7, %s917_s22 }
  0x17   : > { %p915_p11 = pneg %p914_p10  ;;  %p920_p13 = scmp.lt.s32.totalorder %s918_s23, %s911_s10 }
  0x19   : > { %p921_p0 = por %p920_p13, %p919_p12 }
  0x1b   : > { %p922_p1 = pnand %p921_p0, %p915_p11 }
  0x1d   : > { %925 = shalt.err (!%p922_p1)
}
  0x1e   : > { %s1053_s24 = smov 64   ;;  %s1054_s26 = smov 4  }
  0x1f   : > { %790 = dma.hbm_to_vmem [thread:$0]  (!%p1153_p7), %s169_s5, 1024, %s171_s7, %s1157_s9, %s1053_s24, %s1053_s24, %s1054_s26  }
  0x20   : > { %s1296_s28 = sadd.s32 4294967295, %s1050_s19   ;;  %p70_p2 = scmp.ne.s32.totalorder %s1026_s13, %s1022_s12 }
  0x21   : > { %p1175_p3 = scmp.eq.s32.totalorder %s1296_s28, 0  ;;  %p689_p4 = scmp.ge.s32.totalorder %s1050_s19, 1 }
  0x22   : > { %p133_p5 = scmp.lt.s32.totalorder %s1050_s19, 9  ;;  %s1055_s12 = smov [#allocation6]  }
  0x23   : > { %s1303_s29 = scalar_select %p1175_p3, 1, 0 }
  0x24   : > { %p1183_p6 = por %p1175_p3, %p70_p2  ;;  %p1187_p9 = pnand %p689_p4, %p133_p5 }
  0x25   : > { %s145_s5 = sshll.u32 %s1055_s12, 4  ;;  %s695_s6 = sshll.u32 %s1042_s17, 4  ;;  %s146_s5 = int_to_ptr.vmem [resolvable:$true] %s145_s5 }
  0x26   : > { %s1304_s30 = scalar_select %p1183_p6, 1, 0 }
  0x27   : > { %p783_p10 = pneg %p1187_p9  ;;  %s183_s7 = scalar_lea.vmem [#allocation10], %s161_s27 }
  0x28   : > { %s190_s10 = sshll.u32 %s183_s7, 4  ;;  %s188_s23 = scalar_lea.hbm %s1294_s2, %s695_s6  ;;  %s191_s10 = int_to_ptr.vmem [resolvable:$true] %s190_s10 }
  0x29   : > { %p784_p11 = pnand %p783_p10, %p1175_p3  ;;  %s937_s28 = scalar_lea.vmem %s146_s5, 256 }
  0x2a   : > { %p938_p13 = scmp.ne.s32.totalorder %s146_s5, %s937_s28  ;;  %p945_p2 = scmp.lt.s32.totalorder %s146_s5, %s146_s5 }
  0x2b   : > { %p928_p12 = pneg %p784_p11  ;;  %p946_p4 = scmp.lt.s32.totalorder %s937_s28, %s937_s28 }
  0x2d   : > { %p940_p0 = pnand %p938_p13, %p928_p12  ;;  %p947_p5 = por %p946_p4, %p945_p2 }
  0x2f   : > { %p941_p1 = pneg %p940_p0 }
  0x31   : > { %p948_p8 = pnand %p947_p5, %p941_p1 }
  0x33   : > { %951 = shalt.err (!%p948_p8)
}
  0x34   : > { %786 = dma.hbm_to_vmem [thread:$0]  (!%p784_p11), %s1292_s0, 256, %s146_s5, [#allocation7], %s1053_s24, %s1053_s24, %s1054_s26  }
  0x35   : > { %s965_s6 = scalar_lea.vmem %s191_s10, 16  ;;  %p1306_p6 = pneg %p1153_p7 }
  0x36   : > { %p966_p10 = scmp.ne.s32.totalorder %s191_s10, %s965_s6  ;;  %s1056_s7 = smov [#allocation10]  }
  0x37   : > { %s970_s11 = sshll.u32 %s1056_s7, 4  ;;  %s971_s11 = int_to_ptr.vmem [resolvable:$false] %s970_s11 }
  0x38   : > { %p968_p3 = pnand %p966_p10, %p1306_p6  ;;  %s972_s28 = scalar_lea.vmem %s971_s11, 32 }
  0x39   : > { %p973_p13 = scmp.lt.s32.totalorder %s191_s10, %s971_s11  ;;  %p974_p8 = scmp.lt.s32.totalorder %s972_s28, %s965_s6 }
  0x3a   : > { %p969_p12 = pneg %p968_p3 }
  0x3b   : > { %p975_p0 = por %p974_p8, %p973_p13 }
  0x3d   : > { %p976_p1 = pnand %p975_p0, %p969_p12 }
  0x3f   : > { %979 = shalt.err (!%p976_p1)
}
  0x40   : > { %793 = dma.hbm_to_vmem [thread:$0]  (!%p1153_p7), %s188_s23, 16, %s191_s10, %s1157_s9  }
  0x41   : > { %199 = sbr.rel (%p1187_p9) target bundleno = 1315 (0x523), region = 32  ;;  %p1307_p11 = scmp.ne.s32.totalorder (!%p1187_p9), %s1303_s29, 0 }
  0x46   : > { %1013 = dma.done.wait (%p1307_p11), [#allocation7], 256  }
  0x47   : > { %1015 = vsyncadd (%p1307_p11), [#allocation7], 4294967040  ;;  %s1308_s24 = sadd.s32 4294967295, %s1050_s19   ;;  %s207_s5 = sand.u32 1, %s1026_s13  }
  0x48   : > { %s205_s26 = sand.u32 1, %s1308_s24   ;;  %s698_s22 = sshll.u32 %s207_s5, 6 }
  0x49   : > { %s206_s27 = scalar_lea.sflag [#allocation9], %s205_s26  ;;  %s1222_s8 = scalar_lea.vmem [#allocation8], %s698_s22 }
  0x4a   : > { %p1309_p7 = scmp.ne.s32.totalorder %s1304_s30, 0 }
  0x4c   : > { %1017 = dma.done.wait (%p1309_p7), %s206_s27, 1040  }
  0x4d   : > { %1019 = vsyncadd (%p1309_p7), %s206_s27, 4294966256  ;;  %s699_s9 = sshll.u32 %s1038_s16, 1  ;;  %s701_s29 = sshll.u32 %s1038_s16, 4 }
  0x4e   : > { %p246_p3 = scmp.lt.s32.totalorder %s699_s9, 3  ;;  %s1235_s6 = scalar_lea.vmem [#allocation10], %s207_s5 }
  0x4f   : > { %p702_p6 = scmp.ne.s32.totalorder %s1034_s15, 0 }
  0x50   : > { %s1324_s9 = smov (!%p246_p3, %s699_s9), 3  ;;  %s257_s30 = sshra.s32 (!%p702_p6), %s701_s29, 3 }
  0x51   : > { %s700_s4 = sshll.u32 %s1324_s9, 3  ;;  %256 = sbr.rel (%p702_p6) target bundleno = 598 (0x256), region = 48 }
  0x52   : > { %s1233_s12 = scalar_lea.vmem %s1295_s3, %s700_s4  ;;  %s703_s16 = sshll.u32 (!%p702_p6), %s257_s30, 2 }
  0x53   : > { %s260_s7 = scalar_lea.vmem (!%p702_p6), [#allocation6], %s703_s16 }
  0x56   : > { %v869_v0 = vld [vmem:[#allocation6 + $0x8] sm:$0xff]   ;;  %v1057_v1 = vmov 0.0   ;;  %vm1058_vm0 = vmmov 0   ;;  %v870_v3 = vld [vmem:[#allocation6] sm:$0xff]   ;;  %v334_v9 = vlaneseq  ;;  %v337_v11 = vstv %s701_s29 }
  0x57   : > { %747 = vmatprep.subr.bf16.mxu0 %v1057_v1  ;;  %751 = vmatprep.mubr.msk.bf16.mxu0 %vm1058_vm0, %v1057_v1  ;;  %v727_v2 = vld [vmem:[%s260_s7] sm:$0xff]   ;;  %vm358_vm4 = vcmask 261120   ;;  %vm365_vm8 = vcmask 7168  }
  0x58   : > { %748 = vmatpush3.bf16.xpose.msra.mxu0 %v869_v0  ;;  %v728_v4 = vunpack.c.l.bf16 %v727_v2  ;;  %v729_v5 = vunpack.c.h.bf16 %v727_v2  ;;  %v335_v10 = vshrl.u32 %v334_v9, 7  ;;  %v341_v18 = vand.u32 127, %v334_v9 }
  0x59   : > { %749 = vmatprep.subr.bf16.mxu0 %v1057_v1 }
  0x5a   : > { %v265_v6 = vmul.f32 14.285714, %v728_v4  ;;  %v266_v7 = vmul.f32 14.285714, %v729_v5  ;;  %v338_v12 = vadd.s32 %v337_v11, %v335_v10  ;;  %v336_v13 = vadd.s32 8, %v335_v10 }
  0x5c   : > { %v267_v8 = vpack.c.bf16 %v266_v7, %v265_v6  ;;  %v346_v14 = vadd.s32 16, %v338_v12  ;;  %v339_v15 = vadd.s32 %v337_v11, %v336_v13  ;;  %vm342_vm3 = vcmp.eq.s32.totalorder %v338_v12, %v341_v18 }
  0x5e   : > { %734 = vst [vmem:[#allocation2] sm:$0xff] %v267_v8   ;;  %v708_v16 = vadd.s32 4294967264, %v346_v14  ;;  %v347_v17 = vadd.s32 16, %v339_v15  ;;  %vm348_vm1 = vcmp.ge.s32.totalorder %v346_v14, 32  ;;  %vm343_vm6 = vcmp.eq.s32.totalorder %v339_v15, %v341_v18 }
  0x60   : > { %750 = vmatpush3.bf16.xpose.msra.mxu0 %v870_v3  ;;  %v352_v19 = vsel %vm348_vm1, %v708_v16, %v346_v14  ;;  %v709_v20 = vadd.s32 4294967264, %v347_v17  ;;  %vm349_vm2 = vcmp.ge.s32.totalorder %v347_v17, 32 }
  0x61   : > { %vm354_vm5 = vcmp.eq.s32.totalorder %v341_v18, %v352_v19 }
  0x62   : > { %v353_v22 = vsel %vm349_vm2, %v709_v20, %v347_v17 }
  0x63   : > { %vm355_vm7 = vcmp.eq.s32.totalorder %v341_v18, %v353_v22 }
  0x67   : > { %752 = vmatmul.mubr.bf16.vlgmr.msra.gmra.mxu0 %v267_v8 }
 0x127   : > { %v327_v21 = vpop.f32.mrf.mxu0 }
 0x128   : > { %v344_v23 = vsel %vm342_vm3, -1e+30, %v327_v21 }
 0x129   : > { %v753_v24 = vpop.f32.mrf.mxu0  ;;  %v368_v25 = vsel %vm358_vm4, %v344_v23, -inf  ;;  %v356_v26 = vsel %vm354_vm5, %v344_v23, 0.0 }
 0x12a   : > { %369 = vmax.xlane.f32.xlu0 %v368_v25  ;;  %v359_v27 = vsel %vm358_vm4, %v356_v26, 0.0 }
 0x12b   : > { %360 = vadd.xlane.f32.xlu1 %v359_v27  ;;  %v330_v28 = vpop.f32.mrf.mxu0 }
 0x12c   : > { %v345_v29 = vsel %vm343_vm6, -1e+30, %v330_v28 }
 0x12d   : > { %v754_v30 = vpop.f32.mrf.mxu0  ;;  %v371_v31 = vsel %vm358_vm4, %v345_v29, -inf  ;;  %v357_v32 = vsel %vm355_vm7, %v345_v29, 0.0 }
 0x12e   : > { %372 = vmax.xlane.f32.xlu0 %v371_v31  ;;  %v362_v33 = vsel %vm358_vm4, %v357_v32, 0.0 }
 0x12f   : > { %363 = vadd.xlane.f32.xlu1 %v362_v33 }
 0x1b3   : > { %v370_v34 = vpop.xlane.xlu0 %369 }
 0x1b4   : > { %374 = vst.msk [vmem:[#allocation3] sm:$0xff] %vm365_vm8, %v370_v34  ;;  %v376_v35 = vsub.f32 %v344_v23, %v370_v34  ;;  %v361_v36 = vpop.xlane.xlu1 %360 }
 0x1b5   : > { %366 = vst.msk [vmem:[#allocation5] sm:$0xff] %vm365_vm8, %v361_v36 }
 0x1b6   : > { %v378_v37 = vmul.f32 1.442695, %v376_v35 }
 0x1b7   : > { %v373_v38 = vpop.xlane.xlu0 %372 }
 0x1b8   : > { %871 = vpow2.f32 %v378_v37  ;;  %375 = vst.msk [vmem:[#allocation3 + $0x8] sm:$0xff] %vm365_vm8, %v373_v38  ;;  %v377_v39 = vsub.f32 %v345_v29, %v373_v38  ;;  %v364_v40 = vpop.xlane.xlu1 %363 }
 0x1b9   : > { %367 = vst.msk [vmem:[#allocation5 + $0x8] sm:$0xff] %vm365_vm8, %v364_v40 }
 0x1ba   : > { %v380_v41 = vmul.f32 1.442695, %v377_v39 }
 0x1bc   : > { %873 = vpow2.f32 %v380_v41 }
 0x1c5   : > { %v872_v42 = vpop.eup %871 }
 0x1c6   : > { %v382_v43 = vsel %vm358_vm4, %v872_v42, 0.0 }
 0x1c7   : > { %383 = vadd.xlane.f32.xlu0 %v382_v43 }
 0x1c9   : > { %v874_v44 = vpop.eup %873 }
 0x1ca   : > { %v385_v45 = vsel %vm358_vm4, %v874_v44, 0.0 }
 0x1cb   : > { %386 = vadd.xlane.f32.xlu1 %v385_v45 }
 0x250   : > { %v384_v46 = vpop.xlane.xlu0 %383 }
 0x251   : > { %388 = vst.msk [vmem:[#allocation4] sm:$0xff] %vm365_vm8, %v384_v46 }
 0x254   : > { %v387_v47 = vpop.xlane.xlu1 %386 }
 0x255   : > { %389 = vst.msk [vmem:[#allocation4 + $0x8] sm:$0xff] %vm365_vm8, %v387_v47 }
 0x256 PF: > { %v877_v48 = vld [vmem:[%s1222_s8 + $0x38] sm:$0xff]   ;;  %v1059_v49 = vmov 0.0   ;;  %vm1060_vm9 = vmmov 0   ;;  %v878_v50 = vld [vmem:[%s1222_s8 + $0x30] sm:$0xff]   ;;  %v879_v51 = vld [vmem:[%s1222_s8 + $0x28] sm:$0xff]   ;;  %v1061_v1 = vmov 0  }
 0x257   : > { %755 = vmatprep.subr.bf16.mxu0 %v1059_v49  ;;  %771 = vmatprep.mubr.msk.bf16.mxu0 %vm1060_vm9, %v1059_v49  ;;  %v880_v52 = vld [vmem:[%s1222_s8 + $0x20] sm:$0xff]   ;;  %v881_v53 = vld [vmem:[%s1222_s8 + $0x18] sm:$0xff]   ;;  %v882_v54 = vld [vmem:[%s1222_s8 + $0x10] sm:$0xff]   ;;  %vm550_vm10 = vcmask 7168   ;;  %p720_p9 = scmp.ne.s32.totalorder %s1034_s15, 3 }
 0x258   : > { %756 = vmatpush3.bf16.xpose.msra.mxu0 %v877_v48  ;;  %v883_v55 = vld [vmem:[%s1222_s8 + $0x8] sm:$0xff]   ;;  %v884_v56 = vld [vmem:[%s1222_s8] sm:$0xff]   ;;  %v885_v57 = vld [vmem:[#allocation2] sm:$0xff]   ;;  %875 = vset.pattern.permute.xlu1 %v1061_v1 }
 0x259   : > { %757 = vmatprep.subr.bf16.mxu0 %v1059_v49  ;;  %v710_v58 = vld [vmem:[%s1235_s6] ss:$0 sm:$0xff]  ;;  %876 = vset.pattern.permute.xlu0 %v1061_v1  ;;  %v510_v2 = vld [vmem:[#allocation3] sm:$0xff]  ;;  %v511_v5 = vld [vmem:[#allocation3 + $0x8] sm:$0xff] }
 0x25a   : > { %v524_v21 = vld [vmem:[#allocation4] sm:$0xff] }
 0x25c   : > { %v525_v25 = vld [vmem:[#allocation4 + $0x8] sm:$0xff] }
 0x260   : > { %758 = vmatpush3.bf16.xpose.msra.mxu0 %v878_v50 }
 0x261   : > { %759 = vmatprep.subr.bf16.mxu0 %v1059_v49 }
 0x268   : > { %760 = vmatpush3.bf16.xpose.msra.mxu0 %v879_v51 }
 0x269   : > { %761 = vmatprep.subr.bf16.mxu0 %v1059_v49 }
 0x270   : > { %762 = vmatpush3.bf16.xpose.msra.mxu0 %v880_v52 }
 0x271   : > { %763 = vmatprep.subr.bf16.mxu0 %v1059_v49 }
 0x278   : > { %764 = vmatpush3.bf16.xpose.msra.mxu0 %v881_v53 }
 0x279   : > { %765 = vmatprep.subr.bf16.mxu0 %v1059_v49 }
 0x280   : > { %766 = vmatpush3.bf16.xpose.msra.mxu0 %v882_v54 }
 0x281   : > { %767 = vmatprep.subr.bf16.mxu0 %v1059_v49 }
 0x288   : > { %768 = vmatpush3.bf16.xpose.msra.mxu0 %v883_v55 }
 0x289   : > { %769 = vmatprep.subr.bf16.mxu0 %v1059_v49 }
 0x290   : > { %770 = vmatpush3.bf16.xpose.msra.mxu0 %v884_v56 }
 0x297   : > { %772 = vmatmul.mubr.bf16.vlgmr.msra.gmra.mxu0 %v885_v57 }
 0x357   : > { %v503_v59 = vpop.f32.mrf.mxu0 }
 0x358   : > { %v504_v60 = vadd.f32 %v710_v58, %v503_v59 }
 0x359   : > { %v773_v61 = vpop.f32.mrf.mxu0 }
 0x35a   : > { %512 = vmax.xlane.f32.xlu0 %v504_v60 }
 0x35b   : > { %v506_v62 = vpop.f32.mrf.mxu0 }
 0x35c   : > { %v507_v63 = vadd.f32 %v710_v58, %v506_v62 }
 0x35d   : > { %v774_v0 = vpop.f32.mrf.mxu0 }
 0x35e   : > { %514 = vmax.xlane.f32.xlu0 %v507_v63 }
 0x3e3   : > { %v513_v3 = vpop.xlane.xlu0 %512 }
 0x3e4   : > { %v516_v4 = vmax.f32 %v510_v2, %v513_v3 }
 0x3e6   : > { %v518_v6 = vsub.f32 %v510_v2, %v516_v4  ;;  %553 = vst.msk [vmem:[#allocation3] sm:$0xff] %vm550_vm10, %v516_v4  ;;  %530 = vperm.xlu1 %875, %v516_v4  }
 0x3e7   : > { %v515_v7 = vpop.xlane.xlu0 %514 }
 0x3e8   : > { %v517_v8 = vmax.f32 %v511_v5, %v515_v7  ;;  %v520_v18 = vmul.f32 1.442695, %v518_v6 }
 0x3ea   : > { %v519_v9 = vsub.f32 %v511_v5, %v517_v8  ;;  %554 = vst.msk [vmem:[#allocation3 + $0x8] sm:$0xff] %vm550_vm10, %v517_v8  ;;  %535 = vperm.xlu1 %875, %v517_v8  }
 0x3ec   : > { %v522_v19 = vmul.f32 1.442695, %v519_v9 }
 0x461   : > { %v531_v10 = vpop.permute.xlu1 %530 }
 0x462   : > { %v538_v11 = vsub.f32 %v504_v60, %v531_v10 }
 0x464   : > { %v540_v12 = vmul.f32 1.442695, %v538_v11 }
 0x465   : > { %v536_v13 = vpop.permute.xlu1 %535 }
 0x466   : > { %886 = vpow2.f32 %v540_v12  ;;  %v539_v14 = vsub.f32 %v507_v63, %v536_v13 }
 0x468   : > { %v542_v15 = vmul.f32 1.442695, %v539_v14 }
 0x46a   : > { %888 = vpow2.f32 %v542_v15 }
 0x46b   : > { %890 = vpow2.f32 %v520_v18 }
 0x46c   : > { %892 = vpow2.f32 %v522_v19 }
 0x473   : > { %v887_v16 = vpop.eup %886 }
 0x474   : > { %544 = vadd.xlane.f32.xlu0 %v887_v16 }
 0x477   : > { %v889_v17 = vpop.eup %888 }
 0x478   : > { %546 = vadd.xlane.f32.xlu1 %v889_v17  ;;  %v891_v20 = vpop.eup %890 }
 0x479   : > { %v526_v22 = vmul.f32 %v891_v20, %v524_v21  ;;  %v893_v23 = vpop.eup %892 }
 0x47a   : > { %v527_v27 = vmul.f32 %v893_v23, %v525_v25 }
 0x4fd   : > { %v545_v24 = vpop.xlane.xlu0 %544 }
 0x4fe   : > { %v548_v26 = vadd.f32 %v545_v24, %v526_v22 }
 0x500   : > { %551 = vst.msk [vmem:[#allocation4] sm:$0xff] %vm550_vm10, %v548_v26  ;;  %558 = sbr.rel (%p720_p9) target bundleno = 1315 (0x523), region = 52 }
 0x501   : > { %v547_v28 = vpop.xlane.xlu1 %546 }
 0x502   : > { %v549_v29 = vadd.f32 %v547_v28, %v527_v27 }
 0x504   : > { %552 = vst.msk [vmem:[#allocation4 + $0x8] sm:$0xff] %vm550_vm10, %v549_v29 }
 0x505   : > { %v565_v33 = vld [vmem:[#allocation3] sm:$0xff]  ;;  %v566_v36 = vld [vmem:[#allocation3 + $0x8] sm:$0xff] }
 0x506   : > { %v571_v39 = vld [vmem:[#allocation5] sm:$0xff]  ;;  %v572_v42 = vld [vmem:[#allocation5 + $0x8] sm:$0xff] }
 0x507   : > { %v559_v30 = vld [vmem:[#allocation4] sm:$0xff] }
 0x508   : > { %894 = vlog2.f32 %v559_v30 }
 0x50b   : > { %v560_v31 = vld [vmem:[#allocation4 + $0x8] sm:$0xff] }
 0x50c   : > { %896 = vlog2.f32 %v560_v31 }
 0x515   : > { %v895_v32 = vpop.eup %894 }
 0x516   : > { %v562_v35 = vmul.f32 0.6931472, %v895_v32 }
 0x518   : > { %v567_v38 = vadd.f32 %v565_v33, %v562_v35 }
 0x519   : > { %v897_v34 = vpop.eup %896 }
 0x51a   : > { %v564_v37 = vmul.f32 0.6931472, %v897_v34  ;;  %v569_v41 = vmul.f32 0.9, %v567_v38 }
 0x51c   : > { %v568_v40 = vadd.f32 %v566_v36, %v564_v37  ;;  %v573_v44 = vsub.f32 %v569_v41, %v571_v39 }
 0x51e   : > { %v570_v43 = vmul.f32 0.9, %v568_v40  ;;  %575 = vst.msk [vmem:[%s1233_s12] sm:$0xff] %vm550_vm10, %v573_v44 }
 0x520   : > { %v574_v45 = vsub.f32 %v570_v43, %v572_v42 }
 0x522   : > { %576 = vst.msk [vmem:[%s1233_s12 + $0x8] sm:$0xff] %vm550_vm10, %v574_v45 }
 0x523 PF: > { %s17_s19 = sadd.s32 1, %s1050_s19   ;;  %s1310_s12 = smov %s1026_s13 }
 0x524   : > { %p14_p2 = scmp.ge.s32.totalorder %s17_s19, 10   ;;  %s1311_s13 = smov %s1030_s14 }
 0x525   : > { %s1312_s14 = smov %s1140_s25  ;;  %s1313_s15 = smov %s1042_s17 }
 0x526   : > { %s1314_s16 = smov %s1046_s18  ;;  %s1315_s17 = smov %s1318_s20 }
 0x527   : > { %s1316_s18 = smov %s1322_s21  ;;  %16 = sbr.rel (!%p14_p2) target bundleno = 6 (0x6), region = 97 }
 0x52c   :  { %599 = vsyncpa [#allocation7], 1 }
 0x52d   :  { %601 = vsyncpa [#allocation7 + $0x1], 1 }
 0x52e   :  { %602 = vsyncpa [#allocation9], 1 }
 0x52f   :  { %604 = vsyncpa [#allocation9 + $0x1], 1 }

</bundles_post_ra>
